<compile_context>
chip_gen: v5e
topology: v5e:2x2
jax: 0.10.0
libtpu: 0.0.40
codegen_flags: <defaults>
</compile_context>

<pallas_src>
import jax
import jax.numpy as jnp
from jax import lax
from jax.experimental import pallas as pl
from jax.experimental.pallas import tpu as pltpu

IN_DIM = 136
H1_DIM = 64
H2_DIM = 32
OUT_DIM = 5


def pointwise_kernel(x_ref, w1_ref, b1_ref, w2_ref, b2_ref, w3t_ref, b3_ref, o_ref):
    # x tile: (tm, 136). astype is a no-op if the caller streamed bf16.
    x = x_ref[...].astype(jnp.bfloat16)

    # Linear(136 -> 64) + ReLU  (bf16 MXU operands, f32 accumulate, f32 bias/ReLU)
    h1 = jnp.dot(x, w1_ref[...], preferred_element_type=jnp.float32) + b1_ref[...]
    h1 = jnp.maximum(h1, 0.0)
    # Dropout(p=0.5): identity in eval mode.

    # Linear(64 -> 32) + ReLU
    h2 = jnp.dot(h1.astype(jnp.bfloat16), w2_ref[...],
                 preferred_element_type=jnp.float32) + b2_ref[...]
    h2 = jnp.maximum(h2, 0.0)
    # Dropout(p=0.5): identity in eval mode.

    # Linear(32 -> 5), lane-dense output WITHOUT materializing a transpose:
    #   logits_T (5, tm) = contract(w3^T (5, 32), h2 (tm, 32)) over the 32-dim,
    # i.e. the native "q @ k.T" MXU pattern (no XLU vxpose of the activation).
    h2b = h2.astype(jnp.bfloat16)
    logits_t = lax.dot_general(
        w3t_ref[...], h2b,
        dimension_numbers=(((1,), (1,)), ((), ())),
        preferred_element_type=jnp.float32) + b3_ref[...]

    o_ref[...] = logits_t.astype(o_ref.dtype)


def _round_up_128(n):
    return ((n + 127) // 128) * 128


def pointwise_forward(x, params, *, tm=2048, feature_major=False):
    """x: (B, 136) float32 or bfloat16 (bf16 halves HBM reads, same numerics).

    params: dict with w1 (136,64), b1 (1,64), w2 (64,32), b2 (1,32),
            w3 (32,5), b3 (1,5)  -- all float32, PyTorch math y = x @ W + b.
    Returns logits (B, 5) float32, or (5, B) if feature_major=True (skips the
    layout-plumbing transpose for consumers that can take feature-major).
    """
    B, F = x.shape
    assert F == IN_DIM

    # ---- batch-tile selection --------------------------------------------
    # tm is the batch tile (the lane axis of the output) -> multiple of 128.
    # Large tiles amortize the ~0.35us per-grid-step overhead; clamp to the
    # batch so small batches don't allocate huge mostly-OOB tiles.
    assert tm % 128 == 0, "tm must be a multiple of 128 (lane-dense output tile)"
    tm = max(128, min(tm, _round_up_128(B)))
    n_tiles = pl.cdiv(B, tm)
    if n_tiles == 1 and B > 128:
        # Keep >= 2 parallel grid steps so v7x can shard across its 2 TensorCores.
        tm = max(128, _round_up_128((B + 1) // 2))
        n_tiles = pl.cdiv(B, tm)

    # Weights shipped in bf16 (MXU-native); biases stay f32 for the VPU epilogue.
    w1 = params["w1"].astype(jnp.bfloat16)                       # (136, 64)
    b1 = params["b1"].astype(jnp.float32)                        # (1, 64)
    w2 = params["w2"].astype(jnp.bfloat16)                       # (64, 32)
    b2 = params["b2"].astype(jnp.float32)                        # (1, 32)
    w3_t = params["w3"].T.astype(jnp.bfloat16)                   # (5, 32)
    b3_c = params["b3"].reshape(OUT_DIM, 1).astype(jnp.float32)  # (5, 1)

    full = lambda shape: pl.BlockSpec(shape, lambda i: (0, 0))

    # Ragged batch: no pad copy. The last tile is a Pallas edge block (partial
    # input DMA, masked output store). Rows are independent, so garbage in the
    # OOB tail never reaches a valid output element.
    out_t = pl.pallas_call(
        pointwise_kernel,
        out_shape=jax.ShapeDtypeStruct((OUT_DIM, B), jnp.float32),
        grid_spec=pltpu.PrefetchScalarGridSpec(
            num_scalar_prefetch=0,
            grid=(n_tiles,),
            in_specs=[
                pl.BlockSpec((tm, IN_DIM), lambda i: (i, 0)),   # x tile (streamed)
                full((IN_DIM, H1_DIM)),                         # w1
                full((1, H1_DIM)),                              # b1
                full((H1_DIM, H2_DIM)),                         # w2
                full((1, H2_DIM)),                              # b2
                full((OUT_DIM, H2_DIM)),                        # w3^T
                full((OUT_DIM, 1)),                             # b3 (column)
            ],
            # Feature-major output: lane axis = batch tile (multiple of 128).
            out_specs=pl.BlockSpec((OUT_DIM, tm), lambda i: (0, i)),
        ),
        compiler_params=pltpu.CompilerParams(
            dimension_semantics=("parallel",),
            vmem_limit_bytes=48 * 1024 * 1024,
        ),
    )(x, w1, b1, w2, b2, w3_t, b3_c)

    if feature_major:
        return out_t                       # (5, B)
    return out_t.T                         # (B, 5) PyTorch convention


def init_params(key):
    """Deterministic parameter init (uniform, PyTorch-Linear-style bounds)."""
    ks = jax.random.split(key, 6)

    def lin(kw, kb, fan_in, fan_out):
        bound = 1.0 / jnp.sqrt(fan_in)
        w = jax.random.uniform(kw, (fan_in, fan_out), jnp.float32, -bound, bound)
        b = jax.random.uniform(kb, (1, fan_out), jnp.float32, -bound, bound)
        return w, b

    w1, b1 = lin(ks[0], ks[1], IN_DIM, H1_DIM)
    w2, b2 = lin(ks[2], ks[3], H1_DIM, H2_DIM)
    w3, b3 = lin(ks[4], ks[5], H2_DIM, OUT_DIM)
    return dict(w1=w1, b1=b1, w2=w2, b2=b2, w3=w3, b3=b3)


def reference_forward(x, p):
    h1 = jnp.maximum(x @ p["w1"] + p["b1"], 0.0)
    h2 = jnp.maximum(h1 @ p["w2"] + p["b2"], 0.0)
    return h2 @ p["w3"] + p["b3"]


if __name__ == "__main__":
    key = jax.random.PRNGKey(0)
    kx, kp = jax.random.split(key)
    params = init_params(kp)

    # Test 1: small batch (single 128-row edge tile; exercises masked stores).
    B = 8
    x = jax.random.normal(kx, (B, IN_DIM), dtype=jnp.float32)
    out = jax.block_until_ready(pointwise_forward(x, params))
    ref = reference_forward(x, params)
    assert out.shape == (B, OUT_DIM)
    # bf16 matmul operands -> relax tolerance vs the f32 reference.
    assert jnp.allclose(out, ref, atol=2e-2, rtol=2e-2), "mismatch vs reference (B=8)"

    # Test 2: multi-tile grid (3 steps of tm=128), exact division, f32 input.
    B2 = 384
    x2 = jax.random.normal(jax.random.PRNGKey(1), (B2, IN_DIM), dtype=jnp.float32)
    out2 = jax.block_until_ready(pointwise_forward(x2, params, tm=128))
    ref2 = reference_forward(x2, params)
    assert out2.shape == (B2, OUT_DIM)
    assert jnp.allclose(out2, ref2, atol=2e-2, rtol=2e-2), "mismatch vs reference (B=384)"

    # Test 3: ragged batch (B=300 -> 2 tiles of 256, partial edge tile, no pad copy),
    # bf16 streamed input, default (clamped) tm.
    B3 = 300
    x3 = jax.random.normal(jax.random.PRNGKey(2), (B3, IN_DIM), dtype=jnp.float32)
    x3_bf16 = x3.astype(jnp.bfloat16)
    out3 = jax.block_until_ready(pointwise_forward(x3_bf16, params))
    ref3 = reference_forward(x3_bf16.astype(jnp.float32), params)
    assert out3.shape == (B3, OUT_DIM)
    assert jnp.allclose(out3, ref3, atol=3e-2, rtol=3e-2), "mismatch vs reference (B=300, bf16)"

    print("KERNEL_OK")
</pallas_src>

<mosaic_0001>
module attributes {stable_mosaic.version = 11 : i64} {
  func.func @pointwise_kernel(%arg0: i32, %arg1: memref<128x136xf32, #tpu.memory_space<vmem>>, %arg2: memref<136x64xbf16, #tpu.memory_space<vmem>>, %arg3: memref<1x64xf32, #tpu.memory_space<vmem>>, %arg4: memref<64x32xbf16, #tpu.memory_space<vmem>>, %arg5: memref<1x32xf32, #tpu.memory_space<vmem>>, %arg6: memref<5x32xbf16, #tpu.memory_space<vmem>>, %arg7: memref<5x1xf32, #tpu.memory_space<vmem>>, %arg8: memref<5x128xf32, #tpu.memory_space<vmem>>) attributes {dimension_semantics = [#tpu.dimension_semantics<parallel>], iteration_bounds = array<i64: 1>, scalar_prefetch = 0 : i64, scratch_operands = 0 : i64, tpu.core_type = #tpu.core_type<tc>, window_params = [{transform_indices = @transform_0, window_bounds = array<i64: 128, 136>}, {pipeline_mode = #tpu.pipeline_mode<synchronous>, transform_indices = @transform_1, window_bounds = array<i64: 136, 64>}, {pipeline_mode = #tpu.pipeline_mode<synchronous>, transform_indices = @transform_2, window_bounds = array<i64: 1, 64>}, {pipeline_mode = #tpu.pipeline_mode<synchronous>, transform_indices = @transform_3, window_bounds = array<i64: 64, 32>}, {pipeline_mode = #tpu.pipeline_mode<synchronous>, transform_indices = @transform_4, window_bounds = array<i64: 1, 32>}, {pipeline_mode = #tpu.pipeline_mode<synchronous>, transform_indices = @transform_5, window_bounds = array<i64: 5, 32>}, {pipeline_mode = #tpu.pipeline_mode<synchronous>, transform_indices = @transform_6, window_bounds = array<i64: 5, 1>}, {transform_indices = @transform_7, window_bounds = array<i64: 5, 128>}]} {
    %c0 = arith.constant 0 : index
    %c0_0 = arith.constant 0 : index
    %0 = vector.load %arg1[%c0, %c0_0] : memref<128x136xf32, #tpu.memory_space<vmem>>, vector<128x136xf32>
    %1 = arith.truncf %0 : vector<128x136xf32> to vector<128x136xbf16>
    %c0_1 = arith.constant 0 : index
    %c0_2 = arith.constant 0 : index
    %2 = vector.load %arg2[%c0_1, %c0_2] : memref<136x64xbf16, #tpu.memory_space<vmem>>, vector<136x64xbf16>
    %cst = arith.constant dense<0.000000e+00> : vector<128x64xf32>
    %3 = tpu.matmul %1, %2, %cst {dimension_numbers = #tpu.dot_dimension_numbers<[1], [0], [0], [1], [0, 0, 1, 1], [], []>} : vector<128x136xbf16>, vector<136x64xbf16>, vector<128x64xf32> -> vector<128x64xf32>
    %c0_3 = arith.constant 0 : index
    %c0_4 = arith.constant 0 : index
    %4 = vector.load %arg3[%c0_3, %c0_4] : memref<1x64xf32, #tpu.memory_space<vmem>>, vector<1x64xf32>
    %5 = vector.broadcast %4 : vector<1x64xf32> to vector<128x64xf32>
    %6 = arith.addf %3, %5 : vector<128x64xf32>
    %cst_5 = arith.constant 0.000000e+00 : f32
    %7 = vector.broadcast %cst_5 : f32 to vector<128x64xf32>
    %8 = arith.maximumf %6, %7 : vector<128x64xf32>
    %9 = arith.truncf %8 : vector<128x64xf32> to vector<128x64xbf16>
    %c0_6 = arith.constant 0 : index
    %c0_7 = arith.constant 0 : index
    %10 = vector.load %arg4[%c0_6, %c0_7] : memref<64x32xbf16, #tpu.memory_space<vmem>>, vector<64x32xbf16>
    %cst_8 = arith.constant dense<0.000000e+00> : vector<128x32xf32>
    %11 = tpu.matmul %9, %10, %cst_8 {dimension_numbers = #tpu.dot_dimension_numbers<[1], [0], [0], [1], [0, 0, 1, 1], [], []>} : vector<128x64xbf16>, vector<64x32xbf16>, vector<128x32xf32> -> vector<128x32xf32>
    %c0_9 = arith.constant 0 : index
    %c0_10 = arith.constant 0 : index
    %12 = vector.load %arg5[%c0_9, %c0_10] : memref<1x32xf32, #tpu.memory_space<vmem>>, vector<1x32xf32>
    %13 = vector.broadcast %12 : vector<1x32xf32> to vector<128x32xf32>
    %14 = arith.addf %11, %13 : vector<128x32xf32>
    %cst_11 = arith.constant 0.000000e+00 : f32
    %15 = vector.broadcast %cst_11 : f32 to vector<128x32xf32>
    %16 = arith.maximumf %14, %15 : vector<128x32xf32>
    %17 = arith.truncf %16 : vector<128x32xf32> to vector<128x32xbf16>
    %c0_12 = arith.constant 0 : index
    %c0_13 = arith.constant 0 : index
    %18 = vector.load %arg6[%c0_12, %c0_13] : memref<5x32xbf16, #tpu.memory_space<vmem>>, vector<5x32xbf16>
    %cst_14 = arith.constant dense<0.000000e+00> : vector<5x128xf32>
    %19 = tpu.matmul %18, %17, %cst_14 {dimension_numbers = #tpu.dot_dimension_numbers<[1], [1], [0], [0], [0, 0, 1, 0], [], []>} : vector<5x32xbf16>, vector<128x32xbf16>, vector<5x128xf32> -> vector<5x128xf32>
    %c0_15 = arith.constant 0 : index
    %c0_16 = arith.constant 0 : index
    %20 = vector.load %arg7[%c0_15, %c0_16] : memref<5x1xf32, #tpu.memory_space<vmem>>, vector<5x1xf32>
    %21 = vector.broadcast %20 : vector<5x1xf32> to vector<5x128xf32>
    %22 = arith.addf %19, %21 : vector<5x128xf32>
    %c0_17 = arith.constant 0 : index
    %c0_18 = arith.constant 0 : index
    %23 = vector.load %arg8[%c0_17, %c0_18] : memref<5x128xf32, #tpu.memory_space<vmem>>, vector<5x128xf32>
    tpu.vector_store %arg8[%c0_17, %c0_18], %22 {strides = array<i32>} : memref<5x128xf32, #tpu.memory_space<vmem>>, vector<5x128xf32>,
    return
  }
  func.func @transform_0(%arg0: i32) -> (i32, i32) {
    %c0_i32 = arith.constant 0 : i32
    %c0_i32_0 = arith.constant 0 : i32
    return %arg0, %c0_i32 : i32, i32
  }
  func.func @transform_1(%arg0: i32) -> (i32, i32) {
    %c0_i32 = arith.constant 0 : i32
    %c0_i32_0 = arith.constant 0 : i32
    %c0_i32_1 = arith.constant 0 : i32
    return %c0_i32, %c0_i32_0 : i32, i32
  }
  func.func @transform_2(%arg0: i32) -> (i32, i32) {
    %c0_i32 = arith.constant 0 : i32
    %c0_i32_0 = arith.constant 0 : i32
    %c0_i32_1 = arith.constant 0 : i32
    return %c0_i32, %c0_i32_0 : i32, i32
  }
  func.func @transform_3(%arg0: i32) -> (i32, i32) {
    %c0_i32 = arith.constant 0 : i32
    %c0_i32_0 = arith.constant 0 : i32
    %c0_i32_1 = arith.constant 0 : i32
    return %c0_i32, %c0_i32_0 : i32, i32
  }
  func.func @transform_4(%arg0: i32) -> (i32, i32) {
    %c0_i32 = arith.constant 0 : i32
    %c0_i32_0 = arith.constant 0 : i32
    %c0_i32_1 = arith.constant 0 : i32
    return %c0_i32, %c0_i32_0 : i32, i32
  }
  func.func @transform_5(%arg0: i32) -> (i32, i32) {
    %c0_i32 = arith.constant 0 : i32
    %c0_i32_0 = arith.constant 0 : i32
    %c0_i32_1 = arith.constant 0 : i32
    return %c0_i32, %c0_i32_0 : i32, i32
  }
  func.func @transform_6(%arg0: i32) -> (i32, i32) {
    %c0_i32 = arith.constant 0 : i32
    %c0_i32_0 = arith.constant 0 : i32
    %c0_i32_1 = arith.constant 0 : i32
    return %c0_i32, %c0_i32_0 : i32, i32
  }
  func.func @transform_7(%arg0: i32) -> (i32, i32) {
    %c0_i32 = arith.constant 0 : i32
    %c0_i32_0 = arith.constant 0 : i32
    return %c0_i32, %arg0 : i32, i32
  }
}

</mosaic_0001>

<bundles_post_ra>
// kernel: tpu_custom_call.1
= control target key start
LH: loop header
LB: loop body
LE: loop exit
PB: predicated region body
PF: predicated region fallthrough
CT: control target
= control target key end

     0   :  { %vm173_vm0 = vcmask 1043456   ;;  %s844_s0 = inlined_call_operand.vmem [shape: f32[8,136], index: 0, kind: input, shape index: {}]   ;;  %s845_s1 = inlined_call_operand.vmem [shape: bf16[136,64], index: 1, kind: input, shape index: {}]   ;;  %s846_s2 = inlined_call_operand.vmem [shape: f32[1,64], index: 2, kind: input, shape index: {}]   ;;  %s847_s3 = inlined_call_operand.vmem [shape: bf16[64,32], index: 3, kind: input, shape index: {}]   ;;  %s848_s4 = inlined_call_operand.vmem [shape: f32[1,32], index: 4, kind: input, shape index: {}]   ;;  %s849_s5 = inlined_call_operand.vmem [shape: bf16[5,32], index: 5, kind: input, shape index: {}]   ;;  %s850_s6 = inlined_call_operand.vmem [shape: f32[5,1], index: 6, kind: input, shape index: {}]   ;;  %s851_s7 = inlined_call_operand.hbm [shape: f32[5,8], index: 7, kind: output, shape index: {}]  }
   0x1   :  { %v570_v0 = vld [vmem:[%s845_s1 + $0x38] sm:$0xff]  ;;  %v569_v1 = vld [vmem:[%s845_s1 + $0x30] sm:$0xff]  ;;  %v92_v2 = vld [vmem:[%s845_s1 + $0x40] sm:$0xf] }
   0x2   :  { %177 = vmatpush.bf16.msra.mxu0 %v570_v0  ;;  %v130_v3 = vunpack.c.l.b16 %v92_v2  ;;  %v29_v4 = vld [vmem:[%s844_s0 + $0x8] sm:$0xff]  ;;  %v31_v5 = vld [vmem:[%s844_s0 + $0x18] sm:$0xff] }
   0x3   :  { %v568_v7 = vld [vmem:[%s845_s1 + $0x28] sm:$0xff] }
   0x4   :  { %v139_v6 = vpack.c.b16 %v130_v3, %v130_v3 }
   0x6   :  { %178 = vmatpush.bf16.msra.mxu0 %v569_v1 }
   0x7   :  { %12 = vsyncpa [#allocation3], 0  ;;  %v175_v8 = vsel %vm173_vm0, %v139_v6, 0  ;;  %v61_v9 = vpack.c.bf16 %v31_v5, %v29_v4  ;;  %vm148_vm1 = vcmask 64512   ;;  %v567_v10 = vld [vmem:[%s845_s1 + $0x20] sm:$0xff]  ;;  %v566_v11 = vld [vmem:[%s845_s1 + $0x18] sm:$0xff] }
   0x8   :  { %233 = vmatpush.bf16.msra.mxu1 %v175_v8  ;;  %v565_v12 = vld [vmem:[%s845_s1 + $0x10] sm:$0xff]  ;;  %v33_v13 = vld [vmem:[%s844_s0 + $0x28] sm:$0xff]  ;;  %v35_v14 = vld [vmem:[%s844_s0 + $0x38] sm:$0xff]  ;;  %vm335_vm2 = vcmask 523264   ;;  %vm440_vm3 = vcmask 261120   ;;  %s489_s26 = sshll.u32 %s851_s7, 4  ;;  %s490_s26 = int_to_ptr.hbm [resolvable:$true] %s489_s26 }
   0x9   :  { %v564_v15 = vld [vmem:[%s845_s1 + $0x8] sm:$0xff]  ;;  %v63_v16 = vpack.c.bf16 %v35_v14, %v33_v13  ;;  %v563_v17 = vld [vmem:[%s845_s1] sm:$0xff]  ;;  %v30_v19 = vld [vmem:[%s844_s0 + $0x10] sm:$0xff] }
   0xa   :  { %179 = vmatpush.bf16.msra.mxu0 %v568_v7  ;;  %v28_v18 = vld [vmem:[%s844_s0] sm:$0xff]  ;;  %v37_v21 = vld [vmem:[%s844_s0 + $0x48] sm:$0xff]  ;;  %v39_v22 = vld [vmem:[%s844_s0 + $0x58] sm:$0xff] }
   0xb   :  { %530 = vmatmul.msk.bf16.vlgmr.msra.gmra.mxu1 %vm148_vm1, %v61_v9  ;;  %v60_v20 = vpack.c.bf16 %v30_v19, %v28_v18  ;;  %v65_v23 = vpack.c.bf16 %v39_v22, %v37_v21  ;;  %v32_v24 = vld [vmem:[%s844_s0 + $0x20] sm:$0xff]  ;;  %v34_v25 = vld [vmem:[%s844_s0 + $0x30] sm:$0xff]  ;;  %v41_v27 = vld [vmem:[%s844_s0 + $0x68] sm:$0xff] }
   0xc   :  { %v62_v26 = vpack.c.bf16 %v34_v25, %v32_v24  ;;  %v43_v28 = vld [vmem:[%s844_s0 + $0x78] sm:$0xff]  ;;  %v36_v30 = vld [vmem:[%s844_s0 + $0x40] sm:$0xff]  ;;  %v38_v31 = vld [vmem:[%s844_s0 + $0x50] sm:$0xff] }
   0xd   :  { %v67_v29 = vpack.c.bf16 %v43_v28, %v41_v27  ;;  %v64_v32 = vpack.c.bf16 %v38_v31, %v36_v30  ;;  %v45_v33 = vld [vmem:[%s844_s0 + $0x88] sm:$0xff]  ;;  %v47_v34 = vld [vmem:[%s844_s0 + $0x98] sm:$0xff]  ;;  %v40_v36 = vld [vmem:[%s844_s0 + $0x60] sm:$0xff] }
   0xe   :  { %180 = vmatpush.bf16.msra.mxu0 %v567_v10  ;;  %v69_v35 = vpack.c.bf16 %v47_v34, %v45_v33  ;;  %v42_v37 = vld [vmem:[%s844_s0 + $0x70] sm:$0xff]  ;;  %v49_v39 = vld [vmem:[%s844_s0 + $0xa8] sm:$0xff]  ;;  %v51_v40 = vld [vmem:[%s844_s0 + $0xb8] sm:$0xff] }
   0xf   :  { %v66_v38 = vpack.c.bf16 %v42_v37, %v40_v36  ;;  %v71_v41 = vpack.c.bf16 %v51_v40, %v49_v39  ;;  %v44_v42 = vld [vmem:[%s844_s0 + $0x80] sm:$0xff]  ;;  %v46_v43 = vld [vmem:[%s844_s0 + $0x90] sm:$0xff]  ;;  %v53_v45 = vld [vmem:[%s844_s0 + $0xc8] sm:$0xff] }
  0x10   :  { %v68_v44 = vpack.c.bf16 %v46_v43, %v44_v42  ;;  %v55_v46 = vld [vmem:[%s844_s0 + $0xd8] sm:$0xff]  ;;  %v48_v48 = vld [vmem:[%s844_s0 + $0xa0] sm:$0xff]  ;;  %v50_v49 = vld [vmem:[%s844_s0 + $0xb0] sm:$0xff] }
  0x11   :  { %v73_v47 = vpack.c.bf16 %v55_v46, %v53_v45  ;;  %v70_v50 = vpack.c.bf16 %v50_v49, %v48_v48  ;;  %v57_v51 = vld [vmem:[%s844_s0 + $0xe8] sm:$0xff]  ;;  %v59_v52 = vld [vmem:[%s844_s0 + $0xf8] sm:$0xff]  ;;  %v52_v54 = vld [vmem:[%s844_s0 + $0xc0] sm:$0xff] }
  0x12   :  { %181 = vmatpush.bf16.msra.mxu0 %v566_v11  ;;  %v75_v53 = vpack.c.bf16 %v59_v52, %v57_v51  ;;  %v54_v55 = vld [vmem:[%s844_s0 + $0xd0] sm:$0xff]  ;;  %v574_v57 = vld [vmem:[%s847_s3 + $0x18] sm:$0xff]  ;;  %v572_v59 = vld [vmem:[%s847_s3 + $0x8] sm:$0xff] }
  0x13   :  { %v72_v56 = vpack.c.bf16 %v54_v55, %v52_v54  ;;  %364 = vmatpush.bf16.msra.mxu2 %v574_v57  ;;  %v573_v58 = vld [vmem:[%s847_s3 + $0x10] sm:$0xff]  ;;  %v56_v61 = vld [vmem:[%s844_s0 + $0xe0] sm:$0xff] }
  0x14   :  { %v58_v62 = vld [vmem:[%s844_s0 + $0xf0] sm:$0xff]  ;;  %v571_v63 = vld [vmem:[%s847_s3] sm:$0xff] }
  0x15   :  { %v74_v0 = vpack.c.bf16 %v58_v62, %v56_v61  ;;  %v794_v4 = vld [vmem:[%s846_s2] ss:$0 sm:$0xff] }
  0x16   :  { %182 = vmatpush.bf16.msra.mxu0 %v565_v12 }
  0x17   :  { %365 = vmatpush.bf16.msra.mxu2 %v573_v58 }
  0x1a   :  { %183 = vmatpush.bf16.msra.mxu0 %v564_v15 }
  0x1b   :  { %531 = vmatmul.msk.bf16.gmra.mxu1 %vm148_vm1, %v63_v16  ;;  %366 = vmatpush.bf16.msra.mxu2 %v572_v59 }
  0x1e   :  { %184 = vmatpush.bf16.msra.mxu0 %v563_v17 }
  0x1f   :  { %367 = vmatpush.bf16.msra.mxu2 %v571_v63 }
  0x21   :  { %185 = vmatmul.bf16.vlgmr.msra.gmra.mxu0 %v60_v20 }
  0x2b   :  { %532 = vmatmul.msk.bf16.gmra.mxu1 %vm148_vm1, %v65_v23 }
  0x31   :  { %190 = vmatmul.bf16.gmra.mxu0 %v62_v26 }
  0x3b   :  { %533 = vmatmul.msk.bf16.gmra.mxu1 %vm148_vm1, %v67_v29 }
  0x41   :  { %195 = vmatmul.bf16.gmra.mxu0 %v64_v32 }
  0x4b   :  { %534 = vmatmul.msk.bf16.gmra.mxu1 %vm148_vm1, %v69_v35 }
  0x51   :  { %200 = vmatmul.bf16.gmra.mxu0 %v66_v38 }
  0x5b   :  { %535 = vmatmul.msk.bf16.gmra.mxu1 %vm148_vm1, %v71_v41 }
  0x61   :  { %205 = vmatmul.bf16.gmra.mxu0 %v68_v44 }
  0x6b   :  { %536 = vmatmul.msk.bf16.gmra.mxu1 %vm148_vm1, %v73_v47 }
  0x71   :  { %210 = vmatmul.bf16.gmra.mxu0 %v70_v50 }
  0x7b   :  { %537 = vmatmul.msk.bf16.gmra.mxu1 %vm148_vm1, %v75_v53 }
  0x81   :  { %215 = vmatmul.bf16.gmra.mxu0 %v72_v56 }
  0x88   :  { %v235_v60 = vpop.f32.mrf.mxu1 }
  0x90   :  { %v237_v1 = vpop.f32.mrf.mxu1 }
  0x91   :  { %220 = vmatmul.bf16.gmra.mxu0 %v74_v0 }
  0x98   :  { %v240_v2 = vpop.f32.mrf.mxu1 }
  0x9e   :  { %v186_v3 = vpop.f32.mrf.mxu0 }
  0x9f   :  { %v187_v6 = vadd.f32 %v794_v4, %v186_v3 }
  0xa0   :  { %v242_v5 = vpop.f32.mrf.mxu1 }
  0xa1   :  { %v236_v8 = vadd.f32 %v235_v60, %v187_v6 }
  0xa3   :  { %v275_v12 = vmax.f32 %v236_v8, 0.0 }
  0xa6   :  { %v188_v7 = vpop.f32.mrf.mxu0 }
  0xa7   :  { %v189_v9 = vadd.f32 %v794_v4, %v188_v7 }
  0xa8   :  { %v245_v11 = vpop.f32.mrf.mxu1 }
  0xa9   :  { %v238_v10 = vadd.f32 %v237_v1, %v189_v9 }
  0xab   :  { %v276_v13 = vmax.f32 %v238_v10, 0.0 }
  0xad   :  { %v291_v14 = vpack.c.bf16 %v276_v13, %v275_v12 }
  0xae   :  { %v191_v15 = vpop.f32.mrf.mxu0 }
  0xaf   :  { %554 = vmatmul.msk.bf16.vlgmr.msra.gmra.mxu2 %vm335_vm2, %v291_v14  ;;  %v192_v16 = vadd.f32 %v794_v4, %v191_v15 }
  0xb0   :  { %v247_v17 = vpop.f32.mrf.mxu1 }
  0xb1   :  { %v241_v19 = vadd.f32 %v240_v2, %v192_v16 }
  0xb3   :  { %v277_v22 = vmax.f32 %v241_v19, 0.0 }
  0xb6   :  { %v193_v18 = vpop.f32.mrf.mxu0 }
  0xb7   :  { %v194_v20 = vadd.f32 %v794_v4, %v193_v18 }
  0xb8   :  { %v250_v26 = vpop.f32.mrf.mxu1 }
  0xb9   :  { %v243_v21 = vadd.f32 %v242_v5, %v194_v20 }
  0xbb   :  { %v278_v23 = vmax.f32 %v243_v21, 0.0 }
  0xbd   :  { %v292_v24 = vpack.c.bf16 %v278_v23, %v277_v22 }
  0xbe   :  { %v196_v25 = vpop.f32.mrf.mxu0 }
  0xbf   :  { %555 = vmatmul.msk.bf16.gmra.mxu2 %vm335_vm2, %v292_v24  ;;  %v197_v27 = vadd.f32 %v794_v4, %v196_v25 }
  0xc0   :  { %v252_v31 = vpop.f32.mrf.mxu1 }
  0xc1   :  { %v246_v29 = vadd.f32 %v245_v11, %v197_v27  ;;  %v579_v27 = vld [vmem:[%s848_s4] ss:$0 sm:$0xff] }
  0xc3   :  { %v279_v33 = vmax.f32 %v246_v29, 0.0 }
  0xc6   :  { %v198_v28 = vpop.f32.mrf.mxu0 }
  0xc7   :  { %v199_v30 = vadd.f32 %v794_v4, %v198_v28 }
  0xc8   :  { %v255_v37 = vpop.f32.mrf.mxu1 }
  0xc9   :  { %v248_v32 = vadd.f32 %v247_v17, %v199_v30 }
  0xcb   :  { %v280_v34 = vmax.f32 %v248_v32, 0.0 }
  0xcd   :  { %v293_v35 = vpack.c.bf16 %v280_v34, %v279_v33 }
  0xce   :  { %v201_v36 = vpop.f32.mrf.mxu0 }
  0xcf   :  { %556 = vmatmul.msk.bf16.gmra.mxu2 %vm335_vm2, %v293_v35  ;;  %v202_v38 = vadd.f32 %v794_v4, %v201_v36 }
  0xd0   :  { %v257_v45 = vpop.f32.mrf.mxu1 }
  0xd1   :  { %v251_v40 = vadd.f32 %v250_v26, %v202_v38 }
  0xd3   :  { %v281_v43 = vmax.f32 %v251_v40, 0.0 }
  0xd6   :  { %v203_v39 = vpop.f32.mrf.mxu0 }
  0xd7   :  { %v204_v41 = vadd.f32 %v794_v4, %v203_v39 }
  0xd8   :  { %v260_v50 = vpop.f32.mrf.mxu1 }
  0xd9   :  { %v253_v42 = vadd.f32 %v252_v31, %v204_v41 }
  0xdb   :  { %v282_v44 = vmax.f32 %v253_v42, 0.0 }
  0xdd   :  { %v294_v46 = vpack.c.bf16 %v282_v44, %v281_v43 }
  0xde   :  { %v206_v47 = vpop.f32.mrf.mxu0 }
  0xdf   :  { %557 = vmatmul.msk.bf16.gmra.mxu2 %vm335_vm2, %v294_v46  ;;  %v207_v48 = vadd.f32 %v794_v4, %v206_v47 }
  0xe0   :  { %v262_v58 = vpop.f32.mrf.mxu1 }
  0xe1   :  { %v256_v51 = vadd.f32 %v255_v37, %v207_v48 }
  0xe3   :  { %v283_v54 = vmax.f32 %v256_v51, 0.0 }
  0xe6   :  { %v208_v49 = vpop.f32.mrf.mxu0 }
  0xe7   :  { %v209_v52 = vadd.f32 %v794_v4, %v208_v49 }
  0xe8   :  { %v265_v0 = vpop.f32.mrf.mxu1 }
  0xe9   :  { %v258_v53 = vadd.f32 %v257_v45, %v209_v52 }
  0xeb   :  { %v284_v55 = vmax.f32 %v258_v53, 0.0 }
  0xed   :  { %v295_v56 = vpack.c.bf16 %v284_v55, %v283_v54 }
  0xee   :  { %v211_v57 = vpop.f32.mrf.mxu0 }
  0xef   :  { %558 = vmatmul.msk.bf16.gmra.mxu2 %vm335_vm2, %v295_v56  ;;  %v212_v59 = vadd.f32 %v794_v4, %v211_v57 }
  0xf0   :  { %v267_v7 = vpop.f32.mrf.mxu1 }
  0xf1   :  { %v261_v61 = vadd.f32 %v260_v50, %v212_v59 }
  0xf3   :  { %v285_v1 = vmax.f32 %v261_v61, 0.0 }
  0xf6   :  { %v213_v60 = vpop.f32.mrf.mxu0 }
  0xf7   :  { %v214_v62 = vadd.f32 %v794_v4, %v213_v60 }
  0xf8   :  { %v270_v15 = vpop.f32.mrf.mxu1 }
  0xf9   :  { %v263_v63 = vadd.f32 %v262_v58, %v214_v62 }
  0xfb   :  { %v286_v2 = vmax.f32 %v263_v63, 0.0 }
  0xfd   :  { %v296_v3 = vpack.c.bf16 %v286_v2, %v285_v1 }
  0xfe   :  { %v216_v5 = vpop.f32.mrf.mxu0 }
  0xff   :  { %559 = vmatmul.msk.bf16.gmra.mxu2 %vm335_vm2, %v296_v3  ;;  %v217_v6 = vadd.f32 %v794_v4, %v216_v5 }
 0x100   :  { %v272_v21 = vpop.f32.mrf.mxu1 }
 0x101   :  { %v266_v9 = vadd.f32 %v265_v0, %v217_v6 }
 0x103   :  { %v287_v12 = vmax.f32 %v266_v9, 0.0 }
 0x106   :  { %v218_v8 = vpop.f32.mrf.mxu0 }
 0x107   :  { %v219_v10 = vadd.f32 %v794_v4, %v218_v8 }
 0x109   :  { %v268_v11 = vadd.f32 %v267_v7, %v219_v10 }
 0x10b   :  { %v288_v13 = vmax.f32 %v268_v11, 0.0 }
 0x10d   :  { %v297_v14 = vpack.c.bf16 %v288_v13, %v287_v12 }
 0x10e   :  { %v221_v16 = vpop.f32.mrf.mxu0 }
 0x10f   :  { %560 = vmatmul.msk.bf16.gmra.mxu2 %vm335_vm2, %v297_v14  ;;  %v222_v17 = vadd.f32 %v794_v4, %v221_v16 }
 0x111   :  { %v271_v19 = vadd.f32 %v270_v15, %v222_v17 }
 0x113   :  { %v289_v23 = vmax.f32 %v271_v19, 0.0 }
 0x116   :  { %v223_v18 = vpop.f32.mrf.mxu0 }
 0x117   :  { %v224_v20 = vadd.f32 %v794_v4, %v223_v18 }
 0x119   :  { %v273_v22 = vadd.f32 %v272_v21, %v224_v20 }
 0x11b   :  { %v290_v24 = vmax.f32 %v273_v22, 0.0 }
 0x11d   :  { %v298_v25 = vpack.c.bf16 %v290_v24, %v289_v23  ;;  %v434_v24 = vld [vmem:[%s850_s6] sm:$0x1f]  ;;  %s607_s6 = smov [#allocation2]  }
 0x11e   :  { %s487_s23 = sshll.u32 %s607_s6, 4  ;;  %s488_s23 = int_to_ptr.vmem [resolvable:$true] %s487_s23 }
 0x11f   :  { %561 = vmatmul.msk.bf16.gmra.mxu2 %vm335_vm2, %v298_v25  ;;  %v606_v25 = vmov 0  }
 0x120   :  { %577 = vset.pattern.permute.xlu0 %v606_v25 }
 0x121   :  { %437 = vperm.xlu0 %577, %v434_v24  }
 0x132   :  { %v369_v26 = vpop.f32.mrf.mxu2 }
 0x133   :  { %v370_v28 = vadd.f32 %v579_v27, %v369_v26 }
 0x135   :  { %v409_v31 = vmax.f32 %v370_v28, 0.0 }
 0x13a   :  { %v371_v29 = vpop.f32.mrf.mxu2 }
 0x13b   :  { %v372_v30 = vadd.f32 %v579_v27, %v371_v29  ;;  %v433_v29 = vld [vmem:[%s849_s5] sm:$0x7] }
 0x13d   :  { %v410_v32 = vmax.f32 %v372_v30, 0.0 }
 0x13f   :  { %v823_v33 = vpack.c.bf16 %v410_v32, %v409_v31 }
 0x141   :  { %v445_v28 = vsel %vm440_vm3, %v823_v33, 0 }
 0x142   :  { %v374_v4 = vpop.f32.mrf.mxu2 }
 0x143   :  { %v375_v34 = vadd.f32 %v579_v27, %v374_v4 }
 0x145   :  { %v411_v37 = vmax.f32 %v375_v34, 0.0 }
 0x14a   :  { %v376_v35 = vpop.f32.mrf.mxu2 }
 0x14b   :  { %v377_v36 = vadd.f32 %v579_v27, %v376_v35 }
 0x14d   :  { %v412_v38 = vmax.f32 %v377_v36, 0.0 }
 0x14f   :  { %v426_v39 = vpack.c.bf16 %v412_v38, %v411_v37 }
 0x152   :  { %v379_v40 = vpop.f32.mrf.mxu2 }
 0x153   :  { %v380_v41 = vadd.f32 %v579_v27, %v379_v40 }
 0x155   :  { %v413_v44 = vmax.f32 %v380_v41, 0.0 }
 0x15a   :  { %v381_v42 = vpop.f32.mrf.mxu2 }
 0x15b   :  { %v382_v43 = vadd.f32 %v579_v27, %v381_v42 }
 0x15d   :  { %v414_v45 = vmax.f32 %v382_v43, 0.0 }
 0x15f   :  { %v427_v46 = vpack.c.bf16 %v414_v45, %v413_v44 }
 0x161   :  { %v451_v26 = vsel %vm440_vm3, %v427_v46, 0 }
 0x162   :  { %v384_v47 = vpop.f32.mrf.mxu2 }
 0x163   :  { %v385_v48 = vadd.f32 %v579_v27, %v384_v47 }
 0x165   :  { %v415_v51 = vmax.f32 %v385_v48, 0.0 }
 0x16a   :  { %v386_v49 = vpop.f32.mrf.mxu2 }
 0x16b   :  { %v387_v50 = vadd.f32 %v579_v27, %v386_v49 }
 0x16d   :  { %v416_v52 = vmax.f32 %v387_v50, 0.0 }
 0x16f   :  { %v428_v53 = vpack.c.bf16 %v416_v52, %v415_v51 }
 0x171   :  { %v454_v23 = vsel %vm440_vm3, %v428_v53, 0 }
 0x172   :  { %v389_v54 = vpop.f32.mrf.mxu2 }
 0x173   :  { %v390_v55 = vadd.f32 %v579_v27, %v389_v54 }
 0x175   :  { %v417_v58 = vmax.f32 %v390_v55, 0.0 }
 0x17a   :  { %v391_v56 = vpop.f32.mrf.mxu2 }
 0x17b   :  { %v392_v57 = vadd.f32 %v579_v27, %v391_v56 }
 0x17d   :  { %v418_v59 = vmax.f32 %v392_v57, 0.0 }
 0x17f   :  { %v429_v60 = vpack.c.bf16 %v418_v59, %v417_v58 }
 0x181   :  { %v457_v22 = vsel %vm440_vm3, %v429_v60, 0 }
 0x182   :  { %v394_v61 = vpop.f32.mrf.mxu2 }
 0x183   :  { %v395_v16 = vadd.f32 %v579_v27, %v394_v61 }
 0x185   :  { %v419_v19 = vmax.f32 %v395_v16, 0.0 }
 0x18a   :  { %v396_v62 = vpop.f32.mrf.mxu2 }
 0x18b   :  { %v397_v14 = vadd.f32 %v579_v27, %v396_v62 }
 0x18d   :  { %v420_v17 = vmax.f32 %v397_v14, 0.0 }
 0x18f   :  { %v430_v20 = vpack.c.bf16 %v420_v17, %v419_v19 }
 0x191   :  { %v460_v21 = vsel %vm440_vm3, %v430_v20, 0 }
 0x192   :  { %v399_v63 = vpop.f32.mrf.mxu2 }
 0x193   :  { %v400_v9 = vadd.f32 %v579_v27, %v399_v63  ;;  %v438_v30 = vpop.permute.xlu0 %437 }
 0x195   :  { %v421_v13 = vmax.f32 %v400_v9, 0.0 }
 0x19a   :  { %v401_v0 = vpop.f32.mrf.mxu2 }
 0x19b   :  { %v402_v6 = vadd.f32 %v579_v27, %v401_v0 }
 0x19d   :  { %v422_v11 = vmax.f32 %v402_v6, 0.0 }
 0x19f   :  { %v431_v15 = vpack.c.bf16 %v422_v11, %v421_v13 }
 0x1a1   :  { %v463_v18 = vsel %vm440_vm3, %v431_v15, 0 }
 0x1a2   :  { %v404_v1 = vpop.f32.mrf.mxu2 }
 0x1a3   :  { %v405_v2 = vadd.f32 %v579_v27, %v404_v1 }
 0x1a5   :  { %v423_v7 = vmax.f32 %v405_v2, 0.0 }
 0x1aa   :  { %v406_v3 = vpop.f32.mrf.mxu2 }
 0x1ab   :  { %v407_v5 = vadd.f32 %v579_v27, %v406_v3  ;;  %v448_v27 = vsel %vm440_vm3, %v426_v39, 0 }
 0x1ad   :  { %v424_v8 = vmax.f32 %v407_v5, 0.0 }
 0x1af   :  { %v432_v10 = vpack.c.bf16 %v424_v8, %v423_v7 }
 0x1b1   :  { %v466_v12 = vsel %vm440_vm3, %v432_v10, 0 }
 0x1b2   :  { %468 = vmatpush.bf16.xpose.msra.mxu3 %v466_v12 }
 0x1ba   :  { %469 = vmatpush.bf16.xpose.msra.mxu3 %v463_v18 }
 0x1c2   :  { %470 = vmatpush.bf16.xpose.msra.mxu3 %v460_v21 }
 0x1ca   :  { %471 = vmatpush.bf16.xpose.msra.mxu3 %v457_v22 }
 0x1d2   :  { %472 = vmatpush.bf16.xpose.msra.mxu3 %v454_v23 }
 0x1da   :  { %473 = vmatpush.bf16.xpose.msra.mxu3 %v451_v26 }
 0x1e2   :  { %474 = vmatpush.bf16.xpose.msra.mxu3 %v448_v27 }
 0x1ea   :  { %475 = vmatpush.bf16.xpose.msra.mxu3 %v445_v28 }
 0x1f1   :  { %562 = vmatmul.msk.bf16.vlgmr.msra.gmra.mxu3 %vm440_vm3, %v433_v29 }
 0x274   :  { %v477_v31 = vpop.f32.mrf.mxu3 }
 0x275   :  { %v478_v32 = vadd.f32 %v477_v31, %v438_v30 }
 0x277   :  { %481 = vst [vmem:[#allocation2] sm:$0x1f] %v478_v32 }
 0x278   :  { %492 = dma.vmem_to_hbm [thread:$0]  %s488_s23, 128, %s490_s26, [#allocation3]  }
 0x27c   :  { %v479_v33 = vpop.f32.mrf.mxu3 }
 0x27d   :  { %604 = dma.done.wait [#allocation3], 128  }
 0x27e   :  { %605 = vsyncadd [#allocation3], 4294967168 }
 0x27f   :  { %497 = vsyncpa [#allocation3], 1 }

</bundles_post_ra>
